<compile_context>
chip_gen: v7x
topology: tpu7x:2x2x1
jax: 0.10.0
libtpu: 0.0.40
codegen_flags: <defaults>
</compile_context>

<pallas_src>
import jax
import jax.numpy as jnp
from jax.experimental import pallas as pl
from jax.experimental.pallas import tpu as pltpu

BLOCK_SIZE = 64          # max sequence length the PyTorch module supports
N_EMBD = 192
HEAD_SIZE = 64           # head_size constructor arg used for the demo
DROPOUT = 0.2            # unused in eval-mode forward

# Rows (bb*T) fed to the MXU per grid step (review: 2048-8192).
_TARGET_ROWS = 4096
# Per-step VMEM budget for tiles + temporaries (kept under the scoped limit).
_VMEM_BUDGET_BYTES = 24 * 1024 * 1024
# Explicit scoped-VMEM limit: > v5e's 16 MiB default, == v6e/v7x scoped default,
# well under v7x's 64 MiB physical VMEM.
_VMEM_LIMIT_BYTES = 32 * 1024 * 1024


def head_kernel(x_ref, w_ref, o_ref):
    # x_ref : (bb, T, C)    f32 tile of inputs (bb batch elements)
    # w_ref : (C, 3*Hs)     bf16 fused [Wq*scale | Wk | Wv], VMEM resident
    # o_ref : (bb, T, Hs)   f32 output tile
    bb, T, C = x_ref.shape
    Hs = o_ref.shape[-1]

    # In-kernel bf16 cast (input stays f32 in HBM -> no extra wrapper pass).
    # Merging (bb, T) is layout-free when T is a multiple of 8 (true for the
    # module's block_size=64 and the demo shapes); otherwise a small in-VMEM
    # relayout copy is inserted, which is still correct.
    x2 = x_ref[...].astype(jnp.bfloat16).reshape(bb * T, C)

    # --- fused QKV projection: one (bb*T, C) x (C, 3*Hs) MXU matmul --------
    qkv = jnp.dot(x2, w_ref[...], preferred_element_type=jnp.float32)

    q = qkv[:, :Hs].reshape(bb, T, Hs).astype(jnp.bfloat16)
    k = qkv[:, Hs:2 * Hs].reshape(bb, T, Hs).astype(jnp.bfloat16)
    v = qkv[:, 2 * Hs:].reshape(bb, T, Hs).astype(jnp.bfloat16)

    # --- scores (the C**-0.5 scale is pre-folded into the Q weight) --------
    wei = jnp.einsum("bqd,bkd->bqk", q, k,
                     preferred_element_type=jnp.float32)        # f32 (bb,T,T)

    # --- causal mask (equivalent to tril[:T,:T] == 0 -> -inf) --------------
    row = jax.lax.broadcasted_iota(jnp.int32, (T, T), 0)
    col = jax.lax.broadcasted_iota(jnp.int32, (T, T), 1)
    wei = jnp.where((row >= col)[None, :, :], wei, -jnp.inf)

    # --- softmax in f32 (v5e-safe elementwise path) -------------------------
    m = jnp.max(wei, axis=-1, keepdims=True)
    p = jnp.exp(wei - m)
    l = jnp.sum(p, axis=-1, keepdims=True)
    p = p * pl.reciprocal(l, approx=True)        # EUP slot, ~free

    # Dropout(p=0.2) on attention probs: identity in eval mode.
    # TODO(synk): training-mode dropout via pltpu.prng_seed/prng_random_bits.

    # --- attention-weighted values: bf16 MXU, f32 accumulation --------------
    out = jnp.einsum("bqk,bkd->bqd", p.astype(jnp.bfloat16), v,
                     preferred_element_type=jnp.float32)
    o_ref[...] = out.astype(o_ref.dtype)


def _pick_bb(B, T, C, Hs):
    """Batch tile: big enough to beat per-step overhead, small enough for VMEM,
    and leaving >= 2 grid steps so v7x's two TensorCores are both used."""
    bb_rows = max(1, _TARGET_ROWS // T)

    # Per-batch-element VMEM estimate (double-buffered pipelined tiles + temps).
    per_elem = (
        2 * T * C * 4            # x tile (f32), double buffered
        + 2 * T * Hs * 4         # out tile (f32), double buffered
        + T * C * 2              # x bf16 copy
        + T * 3 * Hs * (4 + 2)   # qkv f32 + q/k/v bf16
        + T * T * (4 + 4 + 2)    # scores f32, exp f32, probs bf16
        + T * Hs * 4             # out f32 before cast
    )
    bb_vmem = max(1, _VMEM_BUDGET_BYTES // per_elem)

    bb = max(1, min(B, bb_rows, bb_vmem))
    if B >= 2:
        # Keep at least 2 grid steps -> the "parallel" axis spans both v7x TCs.
        bb = min(bb, -(-B // 2))
    return max(1, bb)


def head_attention(x, wq, wk, wv, *, bb=None):
    """Single causal attention head.

    x : (B, T, C) f32, T <= BLOCK_SIZE.
    wq/wk/wv : (C, head_size), i.e. PyTorch Linear weight transposed.
    Returns (B, T, head_size) in x.dtype.
    """
    B, T, C = x.shape
    Hs = wq.shape[1]
    assert wq.shape == (C, Hs) and wk.shape == (C, Hs) and wv.shape == (C, Hs)
    assert T <= BLOCK_SIZE

    if bb is None:
        bb = _pick_bb(B, T, C, Hs)
    grid_b = pl.cdiv(B, bb)

    # Fuse the three projections into one (C, 3*Hs) bf16 weight and fold the
    # n_embd**-0.5 score scale into the Q columns (one-time, trace-level op).
    wqkv = jnp.concatenate(
        [wq * (C ** -0.5), wk, wv], axis=1).astype(jnp.bfloat16)

    out = pl.pallas_call(
        head_kernel,
        out_shape=jax.ShapeDtypeStruct((B, T, Hs), x.dtype),
        grid=(grid_b,),
        in_specs=[
            # x batch tile, native f32 (no wrapper cast/pad HBM round-trips);
            # ragged batch edges are handled by Pallas boundary masking.
            pl.BlockSpec((bb, T, C), lambda i: (i, 0, 0)),
            # fused QKV weight, fully VMEM resident (constant index_map).
            pl.BlockSpec((C, 3 * Hs), lambda i: (0, 0)),
        ],
        out_specs=pl.BlockSpec((bb, T, Hs), lambda i: (i, 0, 0)),
        compiler_params=pltpu.CompilerParams(
            dimension_semantics=("parallel",),
            vmem_limit_bytes=_VMEM_LIMIT_BYTES),
    )(x, wqkv)

    return out


def init_params(key, n_embd=N_EMBD, head_size=HEAD_SIZE, dtype=jnp.float32):
    """PyTorch nn.Linear(n_embd, head_size, bias=False) init, stored (in,out)."""
    k1, k2, k3 = jax.random.split(key, 3)
    bound = 1.0 / (n_embd ** 0.5)
    wq = jax.random.uniform(k1, (n_embd, head_size), dtype, -bound, bound)
    wk = jax.random.uniform(k2, (n_embd, head_size), dtype, -bound, bound)
    wv = jax.random.uniform(k3, (n_embd, head_size), dtype, -bound, bound)
    return wq, wk, wv


def _reference(x, wq, wk, wv):
    """Pure-JAX f32 reference matching the PyTorch forward (eval mode)."""
    B, T, C = x.shape
    q = x @ wq
    k = x @ wk
    v = x @ wv
    wei = jnp.einsum("bqd,bkd->bqk", q, k) * (C ** -0.5)
    mask = jnp.tril(jnp.ones((T, T), dtype=bool))
    wei = jnp.where(mask[None], wei, -jnp.inf)
    wei = jax.nn.softmax(wei, axis=-1)
    return jnp.einsum("bqk,bkd->bqd", wei, v)


if __name__ == "__main__":
    key = jax.random.PRNGKey(0)
    kx, kp, kx2 = jax.random.split(key, 3)

    wq, wk, wv = init_params(kp)

    # Small demo shapes consistent with the module (T <= block_size = 64).
    B, T = 2, 8
    x = jax.random.normal(kx, (B, T, N_EMBD), dtype=jnp.float32)

    y = head_attention(x, wq, wk, wv)
    y = jax.block_until_ready(y)
    ref = _reference(x, wq, wk, wv)
    assert y.shape == (B, T, HEAD_SIZE)
    # bf16 MXU inputs + approx reciprocal -> loosened tolerance vs f32 reference.
    assert jnp.allclose(y, ref, atol=2e-2, rtol=2e-2), \
        float(jnp.max(jnp.abs(y - ref)))

    # Exercise the ragged-batch (Pallas boundary masking) path:
    # B=5 auto-tiles to bb=3 -> grid=2 with a partially-valid edge block.
    B2, T2 = 5, 16
    x2 = jax.random.normal(kx2, (B2, T2, N_EMBD), dtype=jnp.float32)
    y2 = jax.block_until_ready(head_attention(x2, wq, wk, wv))
    ref2 = _reference(x2, wq, wk, wv)
    assert y2.shape == (B2, T2, HEAD_SIZE)
    assert jnp.allclose(y2, ref2, atol=2e-2, rtol=2e-2), \
        float(jnp.max(jnp.abs(y2 - ref2)))

    print("KERNEL_OK")
</pallas_src>

<mosaic_0001>
module attributes {stable_mosaic.version = 11 : i64} {
  func.func @head_kernel(%arg0: i32, %arg1: memref<1x8x192xf32, #tpu.memory_space<vmem>>, %arg2: memref<192x192xbf16, #tpu.memory_space<vmem>>, %arg3: memref<1x8x64xf32, #tpu.memory_space<vmem>>) attributes {dimension_semantics = [#tpu.dimension_semantics<parallel>], iteration_bounds = array<i64: 2>, scalar_prefetch = 0 : i64, scratch_operands = 0 : i64, tpu.core_type = #tpu.core_type<tc>, window_params = [{transform_indices = @transform_0, window_bounds = array<i64: 1, 8, 192>}, {pipeline_mode = #tpu.pipeline_mode<synchronous>, transform_indices = @transform_1, window_bounds = array<i64: 192, 192>}, {transform_indices = @transform_2, window_bounds = array<i64: 1, 8, 64>}]} {
    %c0 = arith.constant 0 : index
    %c0_0 = arith.constant 0 : index
    %c0_1 = arith.constant 0 : index
    %0 = vector.load %arg1[%c0, %c0_0, %c0_1] : memref<1x8x192xf32, #tpu.memory_space<vmem>>, vector<1x8x192xf32>
    %1 = arith.truncf %0 : vector<1x8x192xf32> to vector<1x8x192xbf16>
    %2 = vector.shape_cast %1 : vector<1x8x192xbf16> to vector<8x192xbf16>
    %c0_2 = arith.constant 0 : index
    %c0_3 = arith.constant 0 : index
    %3 = vector.load %arg2[%c0_2, %c0_3] : memref<192x192xbf16, #tpu.memory_space<vmem>>, vector<192x192xbf16>
    %cst = arith.constant dense<0.000000e+00> : vector<8x192xf32>
    %4 = tpu.matmul %2, %3, %cst {dimension_numbers = #tpu.dot_dimension_numbers<[1], [0], [0], [1], [0, 0, 1, 1], [], []>} : vector<8x192xbf16>, vector<192x192xbf16>, vector<8x192xf32> -> vector<8x192xf32>
    %5 = vector.extract_strided_slice %4 {offsets = [0, 0], sizes = [8, 64], strides = [1, 1]} : vector<8x192xf32> to vector<8x64xf32>
    %6 = vector.shape_cast %5 : vector<8x64xf32> to vector<1x8x64xf32>
    %7 = arith.truncf %6 : vector<1x8x64xf32> to vector<1x8x64xbf16>
    %8 = vector.extract_strided_slice %4 {offsets = [0, 64], sizes = [8, 64], strides = [1, 1]} : vector<8x192xf32> to vector<8x64xf32>
    %9 = vector.shape_cast %8 : vector<8x64xf32> to vector<1x8x64xf32>
    %10 = arith.truncf %9 : vector<1x8x64xf32> to vector<1x8x64xbf16>
    %11 = vector.extract_strided_slice %4 {offsets = [0, 128], sizes = [8, 64], strides = [1, 1]} : vector<8x192xf32> to vector<8x64xf32>
    %12 = vector.shape_cast %11 : vector<8x64xf32> to vector<1x8x64xf32>
    %13 = arith.truncf %12 : vector<1x8x64xf32> to vector<1x8x64xbf16>
    "tpu.trace_start"() <{level = 10 : i32, message = "bqd,bkd->bqk"}> : () -> ()
    %cst_4 = arith.constant dense<0.000000e+00> : vector<1x8x8xf32>
    %14 = tpu.matmul %7, %10, %cst_4 {dimension_numbers = #tpu.dot_dimension_numbers<[2], [2], [1], [1], [0, 0, 0, 1, 1, 1], [0], [0]>} : vector<1x8x64xbf16>, vector<1x8x64xbf16>, vector<1x8x8xf32> -> vector<1x8x8xf32>
    "tpu.trace_stop"() : () -> ()
    %15 = tpu.iota {dimensions = array<i32: 0>} : vector<8x8xi32>
    %16 = tpu.iota {dimensions = array<i32: 1>} : vector<8x8xi32>
    %17 = arith.cmpi sge, %15, %16 : vector<8x8xi32>
    %18 = vector.shape_cast %17 : vector<8x8xi1> to vector<1x8x8xi1>
    %cst_5 = arith.constant 0xFF800000 : f32
    %19 = vector.broadcast %cst_5 : f32 to vector<1x8x8xf32>
    %20 = arith.select %18, %14, %19 : vector<1x8x8xi1>, vector<1x8x8xf32>
    %cst_6 = arith.constant dense<0xFF800000> : vector<1x8xf32>
    %21 = vector.multi_reduction <maximumf>, %20, %cst_6 [2] : vector<1x8x8xf32> to vector<1x8xf32>
    %22 = vector.shape_cast %21 : vector<1x8xf32> to vector<1x8x1xf32>
    %23 = vector.broadcast %22 : vector<1x8x1xf32> to vector<1x8x8xf32>
    %24 = arith.subf %20, %23 : vector<1x8x8xf32>
    %25 = math.exp %24 : vector<1x8x8xf32>
    %cst_7 = arith.constant dense<0.000000e+00> : vector<1x8xf32>
    %26 = vector.multi_reduction <add>, %25, %cst_7 [2] : vector<1x8x8xf32> to vector<1x8xf32>
    %27 = vector.shape_cast %26 : vector<1x8xf32> to vector<1x8x1xf32>
    %28 = tpu.reciprocal %27 {approx = true} : vector<1x8x1xf32> -> vector<1x8x1xf32>
    %29 = vector.broadcast %28 : vector<1x8x1xf32> to vector<1x8x8xf32>
    %30 = arith.mulf %25, %29 : vector<1x8x8xf32>
    %31 = arith.truncf %30 : vector<1x8x8xf32> to vector<1x8x8xbf16>
    "tpu.trace_start"() <{level = 10 : i32, message = "bqk,bkd->bqd"}> : () -> ()
    %cst_8 = arith.constant dense<0.000000e+00> : vector<1x8x64xf32>
    %32 = tpu.matmul %31, %13, %cst_8 {dimension_numbers = #tpu.dot_dimension_numbers<[2], [1], [1], [2], [0, 0, 0, 1, 1, 2], [0], [0]>} : vector<1x8x8xbf16>, vector<1x8x64xbf16>, vector<1x8x64xf32> -> vector<1x8x64xf32>
    "tpu.trace_stop"() : () -> ()
    %c0_9 = arith.constant 0 : index
    %c0_10 = arith.constant 0 : index
    %c0_11 = arith.constant 0 : index
    %33 = vector.load %arg3[%c0_9, %c0_10, %c0_11] : memref<1x8x64xf32, #tpu.memory_space<vmem>>, vector<1x8x64xf32>
    tpu.vector_store %arg3[%c0_9, %c0_10, %c0_11], %32 {strides = array<i32>} : memref<1x8x64xf32, #tpu.memory_space<vmem>>, vector<1x8x64xf32>,
    return
  }
  func.func @transform_0(%arg0: i32) -> (i32, i32, i32) {
    %c0_i32 = arith.constant 0 : i32
    %c0_i32_0 = arith.constant 0 : i32
    %c0_i32_1 = arith.constant 0 : i32
    return %arg0, %c0_i32, %c0_i32_0 : i32, i32, i32
  }
  func.func @transform_1(%arg0: i32) -> (i32, i32) {
    %c0_i32 = arith.constant 0 : i32
    %c0_i32_0 = arith.constant 0 : i32
    %c0_i32_1 = arith.constant 0 : i32
    return %c0_i32, %c0_i32_0 : i32, i32
  }
  func.func @transform_2(%arg0: i32) -> (i32, i32, i32) {
    %c0_i32 = arith.constant 0 : i32
    %c0_i32_0 = arith.constant 0 : i32
    %c0_i32_1 = arith.constant 0 : i32
    return %arg0, %c0_i32, %c0_i32_0 : i32, i32, i32
  }
}

</mosaic_0001>

<bundles_post_ra>
// kernel: tpu_custom_call.1
= control target key start
LH: loop header
LB: loop body
LE: loop exit
PB: predicated region body
PF: predicated region fallthrough
CT: control target
= control target key end

     0   :  { %7 = vsyncpa [#allocation3], 0  ;;  %s1105_s0 = inlined_call_operand.hbm [shape: f32[2,8,192], index: 0, kind: input, shape index: {}]   ;;  %s1106_s1 = inlined_call_operand.hbm [shape: bf16[192,192], index: 1, kind: input, shape index: {}]   ;;  %s1107_s2 = inlined_call_operand.hbm [shape: f32[2,8,64], index: 2, kind: output, shape index: {}]  }
   0x1   :  { %9 = vsyncpa [#allocation3 + $0x1], 0 }
   0x2   :  { %10 = vsyncpa [#allocation6], 0 }
   0x3   :  { %11 = vsyncpa [#allocation4], 0 }
   0x4   :  { %13 = vsyncpa [#allocation4 + $0x1], 0  ;;  %s895_s9 = smov 0   ;;  %s897_s10 = smov 0  }
   0x5   :  { %s899_s11 = smov 0   ;;  %s901_s12 = smov 0  }
   0x6 LB: > { %s916_s13 = sadd.s32 4294967295, %s870_s12   ;;  %s581_s14 = sadd.s32 4294967294, %s870_s12   ;;  %s870_s12 = sphi %s901_s12, %s1127_s12   ;;  %s866_s11 = sphi %s899_s11, %s1126_s11   ;;  %s862_s10 = sphi %s897_s10, %s1125_s10   ;;  %s858_s9 = sphi %s895_s9, %s1124_s9  }
   0x7   : > { %p39_p0 = scmp.ne.s32.totalorder %s862_s10, %s858_s9  ;;  %p1108_p1 = scmp.eq.s32.totalorder %s916_s13, 0 }
   0x8   : > { %p90_p3 = scmp.eq.s32.totalorder %s581_s14, 1  ;;  %p582_p5 = scmp.ge.s32.totalorder %s870_s12, 1 }
   0x9   : > { %p925_p4 = por %p1108_p1, %p39_p0  ;;  %p97_p7 = scmp.lt.s32.totalorder %s870_s12, 3 }
   0xa   : > { %p930_p6 = por %p90_p3, %p39_p0  ;;  %s872_s18 = smov [#allocation5]  }
   0xb   : > { %s1111_s15 = scalar_select %p925_p4, 1, 0 }
   0xc   : > { %s1112_s16 = scalar_select %p930_p6, 1, 0 }
   0xd   : > { %p935_p8 = pnand %p582_p5, %p97_p7  ;;  %s109_s19 = sshll.u32 %s872_s18, 4  ;;  %s939_s19 = int_to_ptr.vmem [resolvable:$true] %s109_s19 }
   0xe   : > { %s951_s21 = sadd.s32 1, %s870_s12   ;;  %s26_s22 = sadd.s32 1, %s866_s11 }
   0xf   : > { %s1113_s17 = scalar_select %p935_p8, 1, 0 }
  0x10   : > { %p648_p9 = pneg %p935_p8  ;;  %s23_s23 = ssub.s32 %s870_s12, %s951_s21 }
  0x11   : > { %s742_s26 = scalar_lea.hbm %s1106_s1, 3072 }
  0x12   : > { %p946_p11 = pnand %p648_p9, %p1108_p1  ;;  %p743_p12 = scmp.ne.s32.totalorder %s1106_s1, %s742_s26 }
  0x13   : > { %p749_p5 = scmp.lt.u32.totalorder %s742_s26, %s1106_s1 }
  0x14   : > { %p744_p13 = pneg %p946_p11 }
  0x16   : > { %p745_p0 = pnand %p744_p13, %p743_p12 }
  0x18   : > { %p746_p3 = pneg %p745_p0 }
  0x1a   : > { %p751_p7 = pnand %p749_p5, %p746_p3 }
  0x1c   : > { %754 = shalt.err (!%p751_p7)
}
  0x1d   : > { %s755_s3 = scalar_lea.vmem %s939_s19, 3072  ;;  %p763_p2 = scmp.lt.s32.totalorder %s939_s19, %s939_s19 }
  0x1e   : > { %p756_p9 = scmp.ne.s32.totalorder %s939_s19, %s755_s3  ;;  %p764_p6 = scmp.lt.s32.totalorder %s755_s3, %s755_s3 }
  0x20   : > { %p758_p10 = pnand %p756_p9, %p744_p13  ;;  %p765_p4 = por %p764_p6, %p763_p2 }
  0x22   : > { %p759_p1 = pneg %p758_p10 }
  0x24   : > { %p766_p8 = pnand %p765_p4, %p759_p1 }
  0x26   : > { %769 = shalt.err (!%p766_p8)
}
  0x27   : > { %s873_s4 = smov 128   ;;  %s874_s5 = smov 8  }
  0x28   : > { %651 = dma.hbm_to_vmem [thread:$0]  (!%p946_p11), %s1106_s1, 3072, %s939_s19, [#allocation6], %s873_s4, %s873_s4, %s874_s5  }
  0x29   : > { %p24_p2 = scmp.eq.s32.totalorder %s23_s23, 0  ;;  %p33_p1 = scmp.ne.s32.totalorder %s866_s11, %s862_s10 }
  0x2a   : > { %p34_p4 = scmp.eq.s32.totalorder %s870_s12, 0  ;;  %p661_p6 = scmp.lt.s32.totalorder %s870_s12, 2 }
  0x2b   : > { %s982_s8 = scalar_select %p24_p2, %s866_s11, %s26_s22  }
  0x2c   : > { %p35_p8 = por %p34_p4, %p33_p1  ;;  %p1115_p10 = scmp.eq.s32.totalorder %s916_s13, 1 }
  0x2d   : > { %s123_s18 = sand.u32 1, %s866_s11   ;;  %s623_s24 = sshll.u32 %s870_s12, 8 }
  0x2e   : > { %p986_p12 = por %p1115_p10, %p33_p1  ;;  %s585_s25 = sshll.u32 %s123_s18, 4 }
  0x2f   : > { %s995_s27 = scalar_lea.hbm %s1105_s0, %s623_s24  ;;  %s127_s19 = scalar_lea.vmem [#allocation2], %s585_s25 }
  0x30   : > { %s135_s22 = sshll.u32 %s127_s19, 4  ;;  %p997_p11 = pnand %p661_p6, %p35_p8  ;;  %s1001_s22 = int_to_ptr.vmem [resolvable:$true] %s135_s22 }
  0x31   : > { %s124_s28 = scalar_lea.sflag [#allocation3], %s123_s18  ;;  %s770_s29 = scalar_lea.hbm %s995_s27, 256 }
  0x32   : > { %p771_p13 = scmp.ne.s32.totalorder %s995_s27, %s770_s29  ;;  %p772_p0 = pneg %p997_p11 }
  0x33   : > { %s775_s4 = scalar_lea.hbm %s1105_s0, 512  ;;  %p776_p7 = scmp.lt.u32.totalorder %s995_s27, %s1105_s0 }
  0x34   : > { %p773_p3 = pnand %p772_p0, %p771_p13  ;;  %p777_p9 = scmp.lt.u32.totalorder %s775_s4, %s770_s29 }
  0x35   : > { %p779_p1 = scmp.lt.u32.totalorder %s770_s29, %s995_s27 }
  0x36   : > { %p774_p5 = pneg %p773_p3  ;;  %p778_p2 = por %p777_p9, %p776_p7 }
  0x38   : > { %p780_p4 = por %p779_p1, %p778_p2 }
  0x3a   : > { %p781_p6 = pnand %p780_p4, %p774_p5 }
  0x3c   : > { %784 = shalt.err (!%p781_p6)
}
  0x3d   : > { %s785_s7 = scalar_lea.vmem %s1001_s22, 256  ;;  %s875_s18 = smov [#allocation2]  }
  0x3e   : > { %p786_p8 = scmp.ne.s32.totalorder %s1001_s22, %s785_s7  ;;  %s790_s24 = sshll.u32 %s875_s18, 4  ;;  %s791_s24 = int_to_ptr.vmem [resolvable:$false] %s790_s24 }
  0x3f   : > { %s792_s25 = scalar_lea.vmem %s791_s24, 512  ;;  %p793_p3 = scmp.lt.s32.totalorder %s1001_s22, %s791_s24 }
  0x40   : > { %p788_p10 = pnand %p786_p8, %p772_p0  ;;  %p794_p7 = scmp.lt.s32.totalorder %s792_s25, %s785_s7 }
  0x42   : > { %p789_p13 = pneg %p788_p10  ;;  %p795_p9 = por %p794_p7, %p793_p3 }
  0x44   : > { %p796_p2 = pnand %p795_p9, %p789_p13 }
  0x46   : > { %799 = shalt.err (!%p796_p2)
}
  0x47   : > { %655 = dma.hbm_to_vmem [thread:$0]  (!%p997_p11), %s995_s27, 256, %s1001_s22, %s124_s28  }
  0x48   : > { %p1118_p5 = scmp.ne.s32.totalorder %s1113_s17, 0 }
  0x49   : > { %s1031_s20 = sand.u32 (!%p1118_p5), 1, %s862_s10   ;;  %p1119_p0 = scmp.ne.s32.totalorder (!%p1118_p5), %s1111_s15, 0 }
  0x4a   : > { %144 = sbr.rel (%p1118_p5) target bundleno = 1227 (0x4cb), region = 28  ;;  %s589_s26 = sshll.u32 (!%p1118_p5), %s1031_s20, 4 }
  0x4b   : > { %s147_s19 = scalar_lea.sflag (!%p1118_p5), [#allocation3], %s1031_s20  ;;  %s1035_s29 = scalar_lea.vmem (!%p1118_p5), [#allocation2], %s589_s26 }
  0x51   : > { %845 = dma.done.wait (%p1119_p0), %s147_s19, 256  }
  0x52   : > { %847 = vsyncadd (%p1119_p0), %s147_s19, 4294967040  ;;  %p1120_p11 = scmp.eq.s32.totalorder %s916_s13, 0 }
  0x54   : > { %849 = dma.done.wait (%p1120_p11), [#allocation6], 3072   ;;  %p1121_p1 = pmov %p1120_p11 }
  0x55   : > { %v702_v0 = vld [vmem:[#allocation5 + $0x4] ss:$8 sps:$4 sm:$0xff]   ;;  %v704_v1 = vld [vmem:[#allocation5] ss:$8 sps:$4 sm:$0xff]   ;;  %v705_v2 = vld [vmem:[#allocation5 + $0x14] ss:$8 sps:$4 sm:$0xff]   ;;  %v420_v38 = vlaneseq }
  0x56   : > { %851 = vsyncadd (%p1121_p1), [#allocation6], 4294964224  ;;  %328 = vmatprep.subr.bf16.mxu0 %v702_v0  ;;  %v707_v3 = vld [vmem:[#allocation5 + $0x10] ss:$8 sps:$4 sm:$0xff]   ;;  %v708_v4 = vld [vmem:[#allocation5 + $0x24] ss:$8 sps:$4 sm:$0xff]  }
  0x57   : > { %329 = vmatpush1.bf16.msra.mxu0 %v704_v1  ;;  %v710_v5 = vld [vmem:[#allocation5 + $0x20] ss:$8 sps:$4 sm:$0xff]   ;;  %v711_v6 = vld [vmem:[#allocation5 + $0x34] ss:$8 sps:$4 sm:$0xff]   ;;  %v713_v7 = vld [vmem:[#allocation5 + $0x30] ss:$8 sps:$4 sm:$0xff]  }
  0x58   : > { %330 = vmatprep.subr.bf16.mxu0 %v705_v2  ;;  %v714_v8 = vld [vmem:[#allocation5 + $0x44] ss:$8 sps:$4 sm:$0xff]   ;;  %v716_v9 = vld [vmem:[#allocation5 + $0x40] ss:$8 sps:$4 sm:$0xff]   ;;  %v717_v10 = vld [vmem:[#allocation5 + $0x54] ss:$8 sps:$4 sm:$0xff]  }
  0x59   : > { %v177_v11 = vld [vmem:[%s1035_s29 + $0x8] sm:$0xff]  ;;  %vm324_vm0 = vcmask 523264   ;;  %v176_v26 = vld [vmem:[%s1035_s29] sm:$0xff]  ;;  %v876_v28 = vmov 0.0   ;;  %vm877_vm1 = vmmov 0   ;;  %s878_s15 = smov 64  }
  0x5a   : > { %v179_v12 = vpack.c.bf16 %v177_v11, %v177_v11  ;;  %v719_v13 = vld [vmem:[#allocation5 + $0x50] ss:$8 sps:$4 sm:$0xff]   ;;  %v720_v14 = vld [vmem:[#allocation5 + $0x64] ss:$8 sps:$4 sm:$0xff]   ;;  %v722_v15 = vld [vmem:[#allocation5 + $0x60] ss:$8 sps:$4 sm:$0xff]   ;;  %v178_v27 = vpack.c.bf16 %v176_v26, %v176_v26  ;;  %628 = vmatprep.subr.bf16.mxu1 %v876_v28  ;;  %630 = vmatprep.mubr.msk.bf16.mxu1 %vm877_vm1, %v876_v28 }
  0x5b   : > { %331 = vmatpush1.bf16.msra.mxu0 %v707_v3  ;;  %v723_v16 = vld [vmem:[#allocation5 + $0x74] ss:$8 sps:$4 sm:$0xff]   ;;  %v725_v17 = vld [vmem:[#allocation5 + $0x70] ss:$8 sps:$4 sm:$0xff]   ;;  %v726_v18 = vld [vmem:[#allocation5 + $0x84] ss:$8 sps:$4 sm:$0xff]  }
  0x5c   : > { %332 = vmatprep.subr.bf16.mxu0 %v708_v4  ;;  %616 = vmatprep.mubr.msk.bf16.mxu0 %vm324_vm0, %v179_v12  ;;  %v728_v19 = vld [vmem:[#allocation5 + $0x80] ss:$8 sps:$4 sm:$0xff]   ;;  %v729_v20 = vld [vmem:[#allocation5 + $0x94] ss:$8 sps:$4 sm:$0xff]   ;;  %v731_v21 = vld [vmem:[#allocation5 + $0x90] ss:$8 sps:$4 sm:$0xff]  }
  0x5d   : > { %v732_v22 = vld [vmem:[#allocation5 + $0xa4] ss:$8 sps:$4 sm:$0xff]   ;;  %v734_v23 = vld [vmem:[#allocation5 + $0xa0] ss:$8 sps:$4 sm:$0xff]   ;;  %v735_v24 = vld [vmem:[#allocation5 + $0xb4] ss:$8 sps:$4 sm:$0xff]  }
  0x5e   : > { %v737_v25 = vld [vmem:[#allocation5 + $0xb0] ss:$8 sps:$4 sm:$0xff]   ;;  %vm442_vm2 = vcmask 1043456   ;;  %v421_v39 = vshrl.u32 %v420_v38, 7  ;;  %v423_v40 = vand.u32 127, %v420_v38  ;;  %vm426_vm4 = vcmask 64512  }
  0x5f   : > { %333 = vmatpush1.bf16.msra.mxu0 %v710_v5  ;;  %s591_s17 = sshll.u32 %s1031_s20, 3  ;;  %s620_s27 = sshll.u32 %s916_s13, 7 }
  0x60   : > { %334 = vmatprep.subr.bf16.mxu0 %v711_v6  ;;  %vm424_vm3 = vcmp.ge.s32.totalorder %v421_v39, %v423_v40  ;;  %s174_s22 = scalar_lea.vmem [#allocation7], %s591_s17  ;;  %s1060_s3 = scalar_lea.hbm %s1107_s2, %s620_s27 }
  0x61   : > { %s501_s23 = sshll.u32 %s174_s22, 4  ;;  %s488_s4 = scalar_lea.sflag [#allocation4], %s1031_s20  ;;  %s1062_s23 = int_to_ptr.vmem [resolvable:$true] %s501_s23 }
  0x62   : > { %s800_s5 = scalar_lea.vmem %s1062_s23, 128  ;;  %s879_s13 = smov [#allocation7]  }
  0x63   : > { %335 = vmatpush1.bf16.msra.mxu0 %v713_v7  ;;  %p801_p4 = scmp.ne.s32.totalorder %s1062_s23, %s800_s5  ;;  %s804_s6 = sshll.u32 %s879_s13, 4  ;;  %s805_s6 = int_to_ptr.vmem [resolvable:$false] %s804_s6 }
  0x64   : > { %336 = vmatprep.subr.bf16.mxu0 %v714_v8  ;;  %s806_s7 = scalar_lea.vmem %s805_s6, 256  ;;  %p807_p10 = scmp.lt.s32.totalorder %s1062_s23, %s805_s6 }
  0x65   : > { %p802_p6 = pnand %p801_p4, %p986_p12  ;;  %p808_p13 = scmp.lt.s32.totalorder %s806_s7, %s800_s5 }
  0x67   : > { %337 = vmatpush1.bf16.msra.mxu0 %v716_v9  ;;  %p803_p8 = pneg %p802_p6  ;;  %p809_p3 = por %p808_p13, %p807_p10 }
  0x68   : > { %338 = vmatprep.subr.bf16.mxu0 %v717_v10 }
  0x69   : > { %p810_p7 = pnand %p809_p3, %p803_p8 }
  0x6b   : > { %339 = vmatpush1.bf16.msra.mxu0 %v719_v13 }
  0x6c   : > { %340 = vmatprep.subr.bf16.mxu0 %v720_v14 }
  0x6f   : > { %341 = vmatpush1.bf16.msra.mxu0 %v722_v15 }
  0x70   : > { %342 = vmatprep.subr.bf16.mxu0 %v723_v16 }
  0x73   : > { %343 = vmatpush1.bf16.msra.mxu0 %v725_v17 }
  0x74   : > { %344 = vmatprep.subr.bf16.mxu0 %v726_v18 }
  0x77   : > { %345 = vmatpush1.bf16.msra.mxu0 %v728_v19 }
  0x78   : > { %346 = vmatprep.subr.bf16.mxu0 %v729_v20 }
  0x7b   : > { %347 = vmatpush1.bf16.msra.mxu0 %v731_v21 }
  0x7c   : > { %348 = vmatprep.subr.bf16.mxu0 %v732_v22 }
  0x7f   : > { %349 = vmatpush1.bf16.msra.mxu0 %v734_v23 }
  0x80   : > { %350 = vmatprep.subr.bf16.mxu0 %v735_v24 }
  0x83   : > { %351 = vmatpush1.bf16.msra.mxu0 %v737_v25 }
  0x86   : > { %361 = vmatmul.mubr.bf16.vlgmr.msra.gmra.mrb[0].mxu0 %v178_v27 }
 0x159   : > { %v362_v29 = vpop.f32.mrb[0].mxu0 }
 0x15a   : > { %v369_v30 = vpack.c.bf16 %v362_v29, %v362_v29  ;;  %v364_v31 = vpop.f32.mrb[1].mxu0 }
 0x15b   : > { %v366_v32 = vpop.f32.mrb[2].mxu0  ;;  %v370_v36 = vpack.c.bf16 %v364_v31, %v364_v31 }
 0x15c   : > { %372 = vrot.lane.b32.xlu0 %v369_v30, %s878_s15  ;;  %v367_v33 = vpop.f32.mrb[3].mxu0 }
 0x15d   : > { %v444_v37 = vsel %vm442_vm2, %v370_v36, 0 }
 0x1ce   : > { %v373_v34 = vpop.permute.xlu0 %372 }
 0x1cf   : > { %v378_v35 = vsel %vm324_vm0, %v373_v34, 0 }
 0x1d0   : > { %629 = vmatpush3.bf16.xpose.msra.mxu1 %v378_v35 }
 0x1d1   : > { %634 = vmatprep.subr.bf16.mxu1 %v876_v28 }
 0x1d7   : > { %631 = vmatmul.mubr.msk.bf16.vlgmr.msra.gmra.mrb[0].mxu1 %vm324_vm0, %v369_v30 }
 0x1d8   : > { %635 = vmatpush3.bf16.msra.mxu1 %v444_v37  ;;  %636 = vmatprep.mubr.msk.bf16.mxu1 %vm877_vm1, %v876_v28 }
 0x2aa   : > { %v414_v41 = vpop.f32.mrb[0].mxu1 }
 0x2ab   : > { %v425_v42 = vsel %vm424_vm3, %v414_v41, -inf  ;;  %v632_v43 = vpop.f32.mrb[1].mxu1 }
 0x2ac   : > { %v417_v44 = vpop.f32.mrb[2].mxu1  ;;  %v427_v45 = vsel %vm426_vm4, %v425_v42, -inf }
 0x2ad   : > { %428 = vmax.xlane.f32.xlu0 %v427_v45  ;;  %v633_v46 = vpop.f32.mrb[3].mxu1 }
 0x33a   : > { %v429_v47 = vpop.xlane.xlu0 %428 }
 0x33b   : > { %v430_v48 = vsub.f32 %v425_v42, %v429_v47 }
 0x33d   : > { %v431_v49 = vmul.f32 1.442695, %v430_v48 }
 0x33f   : > { %738 = vpow2.f32 %v431_v49 }
 0x349   : > { %v739_v50 = vpop.eup %738 }
 0x34a   : > { %v433_v51 = vsel %vm426_vm4, %v739_v50, 0.0 }
 0x34b   : > { %434 = vadd.xlane.f32.xlu1 %v433_v51 }
 0x3d8   : > { %v435_v52 = vpop.xlane.xlu1 %434 }
 0x3d9   : > { %740 = vrcp.f32 %v435_v52 }
 0x3e3   : > { %v741_v53 = vpop.eup %740 }
 0x3e4   : > { %v437_v54 = vmul.f32 %v741_v53, %v739_v50 }
 0x3e6   : > { %v438_v55 = vpack.c.bf16 %v437_v54, %v437_v54 }
 0x3e8   : > { %637 = vmatmul.mubr.msk.bf16.vlgmr.msra.gmra.mrb[4].mxu1 %vm426_vm4, %v438_v55 }
 0x4bb   : > { %v480_v56 = vpop.f32.mrb[4].mxu1 }
 0x4bc   : > { %486 = vst.msk [vmem:[%s174_s22] sm:$0xff] %vm324_vm0, %v480_v56  ;;  %v638_v57 = vpop.f32.mrb[5].mxu1 }
 0x4bd   : > { %v483_v58 = vpop.f32.mrb[6].mxu1 }
 0x4be   : > { %813 = shalt.err (!%p810_p7)
}
 0x4bf   : > { %s814_s18 = scalar_lea.hbm %s1060_s3, 128  ;;  %s818_s20 = scalar_lea.hbm %s1107_s2, 256 }
 0x4c0   : > { %p815_p9 = scmp.ne.s32.totalorder %s1060_s3, %s814_s18  ;;  %p819_p0 = scmp.lt.u32.totalorder %s1060_s3, %s1107_s2 }
 0x4c1   : > { %p820_p11 = scmp.lt.u32.totalorder %s818_s20, %s814_s18  ;;  %p822_p4 = scmp.lt.u32.totalorder %s814_s18, %s1060_s3 }
 0x4c2   : > { %p816_p2 = pnand %p815_p9, %p986_p12 }
 0x4c3   : > { %p821_p1 = por %p820_p11, %p819_p0 }
 0x4c4   : > { %p817_p5 = pneg %p816_p2 }
 0x4c5   : > { %p823_p6 = por %p822_p4, %p821_p1 }
 0x4c7   : > { %p824_p8 = pnand %p823_p6, %p817_p5 }
 0x4c9   : > { %827 = shalt.err (!%p824_p8)
}
 0x4ca   : > { %646 = dma.vmem_to_hbm [thread:$0]  (%p986_p12), %s1062_s23, 128, %s1060_s3, %s488_s4   ;;  %v639_v59 = vpop.f32.mrb[7].mxu1 }
 0x4cb PF: > { %s513_s29 = sand.u32 1, %s858_s9   ;;  %p1122_p10 = scmp.ne.s32.totalorder %s1112_s16, 0 }
 0x4cc   : > { %p1123_p13 = scmp.ge.s32.totalorder %s870_s12, 2  ;;  %s514_s15 = scalar_lea.sflag [#allocation4], %s513_s29 }
 0x4ce   : > { %p657_p3 = pnand %p1123_p13, %p1122_p10 }
 0x4d0   : > { %853 = dma.done.wait (!%p657_p3), %s514_s15, 128  }
 0x4d1   : > { %855 = vsyncadd (!%p657_p3), %s514_s15, 4294967168  ;;  %p16_p7 = scmp.ge.s32.totalorder %s951_s21, 4   ;;  %s1124_s9 = smov %s862_s10 }
 0x4d2   : > { %s1125_s10 = smov %s866_s11  ;;  %s1126_s11 = smov %s982_s8 }
 0x4d3   : > { %s1127_s12 = smov %s951_s21  ;;  %18 = sbr.rel (!%p16_p7) target bundleno = 6 (0x6), region = 77 }
 0x4da   :  { %519 = vsyncpa [#allocation3], 1 }
 0x4db   :  { %521 = vsyncpa [#allocation3 + $0x1], 1 }
 0x4dc   :  { %522 = vsyncpa [#allocation6], 1 }
 0x4dd   :  { %523 = vsyncpa [#allocation4], 1 }
 0x4de   :  { %525 = vsyncpa [#allocation4 + $0x1], 1 }

</bundles_post_ra>
